<compile_context>
chip_gen: v5e
topology: v5e:2x2
jax: 0.10.0
libtpu: 0.0.40
codegen_flags: <defaults>
</compile_context>

<pallas_src>
import functools

import jax
import jax.numpy as jnp
from jax.experimental import pallas as pl
from jax.experimental.pallas import tpu as pltpu

_LN_EPS = 1e-5


def _patch_merge_kernel(x_ref, w_ref, csum_ref, b_ref, o_ref, *,
                        center_for_mxu):
    # x_ref:    (th, 2, W2, 2C) raw pixels; axis 1 = row offset i inside the
    #           2x2 window, last dim packs (col offset j, channel c).
    # w_ref:    (2, 2C, 2C)  folded gamma * W^T, split by row offset (resident).
    # csum_ref: (1, 1, 2C)   column sums of the folded weight (f32, resident).
    # b_ref:    (1, 1, 2C)   folded beta @ W^T (f32, resident).
    # o_ref:    (th, W2, 2C) merged + normalized + reduced tokens.
    x = x_ref[...]
    xf = x.astype(jnp.float32)
    th, two, w2, c2 = xf.shape
    inv_n = 1.0 / float(two * c2)

    # One-pass LayerNorm statistics over the merged 4C channels (axes 1, 3).
    s1 = jnp.sum(xf, axis=(1, 3), keepdims=True)
    s2 = jnp.sum(xf * xf, axis=(1, 3), keepdims=True)
    mean = s1 * inv_n                                    # (th, 1, w2, 1)
    var = s2 * inv_n - mean * mean
    inv_std = jax.lax.rsqrt(var + _LN_EPS)               # (th, 1, w2, 1)

    mm_dtype = w_ref.dtype
    if center_for_mxu:
        # Reduced-precision MXU path: center in f32 before the cast so the
        # matmul keeps precision; the rsqrt scaling stays in the epilogue.
        xin = xf - mean
    else:
        # Exact path: feed raw activations to the MXU; centering and
        # normalization are applied in the 2C-wide epilogue via colsum.
        xin = x
    x0 = xin[:, 0, :, :].reshape(th * w2, c2).astype(mm_dtype)
    x1 = xin[:, 1, :, :].reshape(th * w2, c2).astype(mm_dtype)

    acc = jnp.dot(x0, w_ref[0], preferred_element_type=jnp.float32)
    acc = acc + jnp.dot(x1, w_ref[1], preferred_element_type=jnp.float32)
    acc = acc.reshape(th, w2, c2)

    mean3 = mean[:, 0, :, :]                             # (th, w2, 1)
    istd3 = inv_std[:, 0, :, :]                          # (th, w2, 1)
    if center_for_mxu:
        out = acc * istd3 + b_ref[...]
    else:
        out = (acc - mean3 * csum_ref[...]) * istd3 + b_ref[...]
    o_ref[...] = out.astype(o_ref.dtype)


def _physical_vmem_bytes():
    """Per-TensorCore VMEM capacity; conservative fallback if unavailable."""
    try:
        info = pltpu.get_tpu_info()
        cap = int(getattr(info, "vmem_capacity_bytes", 0))
        if cap > 0:
            return cap
    except Exception:
        pass
    return 64 << 20  # v7x per-core size: safe lower bound across generations


def patch_merging_pallas(x, input_resolution, gamma, beta, w_reduction, *,
                         matmul_dtype=None, target_block_bytes=2 << 20,
                         vmem_budget_bytes=None):
    """Swin PatchMerging forward (2x2 merge -> LayerNorm(4C) -> Linear 4C->2C).

    x: (B, L, C) with L == H*W; gamma/beta: (4C,); w_reduction: (2C, 4C).
    Returns (B, (H//2)*(W//2), 2C) in x.dtype.
    """
    B, L, C = x.shape
    H, W = input_resolution
    assert L == H * W, "dimention error"
    c4, c2 = 4 * C, 2 * C

    if matmul_dtype is None:
        # bf16 MXU inputs (f32 LN stats + f32 accumulation) are ~3x faster on
        # v6e/v7x and halve the resident weight footprint; pass
        # matmul_dtype=jnp.float32 for an exact f32 path.
        matmul_dtype = jnp.bfloat16 if x.dtype == jnp.float32 else x.dtype
    matmul_dtype = jnp.dtype(matmul_dtype)
    center_for_mxu = matmul_dtype != jnp.dtype(jnp.float32)

    xhw = x.reshape(B, H, W, C)
    pad_odd = (H % 2 != 0) and (W % 2 != 0)
    if pad_odd:
        # TODO(synk): mirrors the reference's both-odd branch (pad top/left by
        # one, merge, then drop the first merged row/col); LN + reduction are
        # per-token, so cropping after the kernel is equivalent.
        xhw = jnp.pad(xhw, ((0, 0), (1, 0), (1, 0), (0, 0)))
    Hp, Wp = xhw.shape[1], xhw.shape[2]
    assert Hp % 2 == 0 and Wp % 2 == 0, "H and W must both be even (or both odd)"
    H2, W2 = Hp // 2, Wp // 2
    R = B * H2

    # Free reshape: row index r = b*H2 + h', axis 1 = row offset i, last dim
    # packs (col offset j, channel c) -> kernel channel order is (i, j, c).
    x_r = xhw.reshape(R, 2, W2, c2)

    # Permute LN/linear params from the PyTorch concat order
    # [x0,x1,x2,x3] = [(i0,j0),(i1,j0),(i0,j1),(i1,j1)] into the kernel's
    # (i, j) order [(i0,j0),(i0,j1),(i1,j0),(i1,j1)], then fold gamma into the
    # reduction weight and beta into the bias.
    perm = jnp.array([0, 2, 1, 3], dtype=jnp.int32)
    gamma_k = gamma.astype(jnp.float32).reshape(4, C)[perm].reshape(c4)
    beta_k = beta.astype(jnp.float32).reshape(4, C)[perm].reshape(c4)
    wT_k = (w_reduction.astype(jnp.float32).T
            .reshape(4, C, c2)[perm].reshape(c4, c2))
    w_prime = gamma_k[:, None] * wT_k                      # (4C, 2C), f32
    w_folded = w_prime.reshape(2, c2, c2).astype(matmul_dtype)
    # Column sums of the folded weight, used by the exact-path epilogue:
    #   out = istd * (x @ W' - mean * colsum) + beta @ W^T.
    csum = jnp.sum(w_prime, axis=0).reshape(1, 1, c2).astype(jnp.float32)
    bias = (beta_k @ wT_k).reshape(1, 1, c2).astype(jnp.float32)

    # ---- generation-aware tile sizing -------------------------------------
    phys_vmem = _physical_vmem_bytes()
    if vmem_budget_bytes is None:
        vmem_budget_bytes = int(0.4 * phys_vmem)

    in_b = jnp.dtype(x.dtype).itemsize
    out_b = in_b
    w_b = matmul_dtype.itemsize
    # Live VMEM per merged token (counts all temporaries, conservatively).
    per_token = (2 * c4 * in_b        # double-buffered input block
                 + 2 * c2 * out_b     # double-buffered output block
                 + c4 * 4             # f32 stats view of x
                 + c4 * 4             # x*x (or centered copy)
                 + c4 * w_b           # matmul-staged x0/x1
                 + 2 * c2 * 4)        # f32 accumulator + epilogue temp
    # Resident weight/bias/colsum (count both pipeline buffers to be safe).
    fixed = 2 * (2 * c2 * c2 * w_b) + 4 * c2 * 4

    per_row = W2 * per_token
    bytes_per_row_in = 2 * W2 * c2 * in_b     # input bytes per merged row
    avail = max(vmem_budget_bytes - fixed, per_row)
    th_vmem = max(1, avail // per_row)
    th_bytes = max(1, target_block_bytes // max(bytes_per_row_in, 1))
    th = int(min(R, th_vmem, th_bytes))

    # Keep the ("parallel",) grid at >=2 steps so both v7x TensorCores get
    # work and the DMA pipeline has something to overlap; prefer >=8 steps
    # when blocks stay >= 512 KiB of input.
    if R >= 2:
        th8 = pl.cdiv(R, 8)
        if th8 * bytes_per_row_in >= (512 << 10):
            th = min(th, th8)
        else:
            th = min(th, pl.cdiv(R, 2))
    th = max(1, int(th))
    # Rebalance so the trailing block is not mostly masked.
    steps = pl.cdiv(R, th)
    th = pl.cdiv(R, steps)
    grid_steps = pl.cdiv(R, th)

    est = fixed + th * W2 * per_token
    vmem_limit = int(min(int(0.85 * phys_vmem), max(32 << 20, est + (8 << 20))))
    vmem_limit = int(min(max(vmem_limit, est + (2 << 20)), phys_vmem))

    kernel = functools.partial(_patch_merge_kernel,
                               center_for_mxu=center_for_mxu)

    out3 = pl.pallas_call(
        kernel,
        out_shape=jax.ShapeDtypeStruct((R, W2, c2), x.dtype),
        grid_spec=pltpu.PrefetchScalarGridSpec(
            num_scalar_prefetch=0,
            grid=(grid_steps,),
            in_specs=[
                pl.BlockSpec((th, 2, W2, c2), lambda i: (i, 0, 0, 0)),
                pl.BlockSpec((2, c2, c2), lambda i: (0, 0, 0)),
                pl.BlockSpec((1, 1, c2), lambda i: (0, 0, 0)),
                pl.BlockSpec((1, 1, c2), lambda i: (0, 0, 0)),
            ],
            out_specs=pl.BlockSpec((th, W2, c2), lambda i: (i, 0, 0)),
        ),
        compiler_params=pltpu.CompilerParams(
            dimension_semantics=("parallel",),
            vmem_limit_bytes=vmem_limit,
        ),
    )(x_r, w_folded, csum, bias)

    out = out3.reshape(B, H2, W2, c2)
    if pad_odd:
        out = out[:, 1:, 1:, :]
    return out.reshape(B, out.shape[1] * out.shape[2], c2)


def patch_merging_ref(x, input_resolution, gamma, beta, w_reduction):
    """Pure-JAX reference mirroring the PyTorch forward (even H, W path)."""
    B, L, C = x.shape
    H, W = input_resolution
    xhw = x.reshape(B, H, W, C).astype(jnp.float32)
    x0 = xhw[:, 0::2, 0::2, :]
    x1 = xhw[:, 1::2, 0::2, :]
    x2 = xhw[:, 0::2, 1::2, :]
    x3 = xhw[:, 1::2, 1::2, :]
    xm = jnp.concatenate([x0, x1, x2, x3], axis=-1)
    xm = xm.reshape(B, (H // 2) * (W // 2), 4 * C)
    mean = jnp.mean(xm, axis=-1, keepdims=True)
    var = jnp.mean((xm - mean) ** 2, axis=-1, keepdims=True)
    y = (xm - mean) / jnp.sqrt(var + _LN_EPS) * gamma + beta
    return jnp.einsum("blk,ok->blo", y, w_reduction.astype(jnp.float32))


if __name__ == "__main__":
    # Shapes consistent with the module: B=2, dim(C)=4, H=W=16 -> L=256.
    B, C, H, W = 2, 4, 16, 16
    key = jax.random.PRNGKey(0)
    kx, kg, kb, kw = jax.random.split(key, 4)

    x = jax.random.normal(kx, (B, H * W, C), dtype=jnp.float32)
    gamma = 1.0 + 0.1 * jax.random.normal(kg, (4 * C,), dtype=jnp.float32)
    beta = 0.1 * jax.random.normal(kb, (4 * C,), dtype=jnp.float32)
    w_reduction = jax.random.normal(kw, (2 * C, 4 * C), dtype=jnp.float32) * (
        1.0 / jnp.sqrt(4.0 * C))

    ref = patch_merging_ref(x, (H, W), gamma, beta, w_reduction)

    # Exact f32 MXU path (LayerNorm fully folded into the matmul epilogue).
    out_f32 = patch_merging_pallas(x, (H, W), gamma, beta, w_reduction,
                                   matmul_dtype=jnp.float32)
    out_f32 = jax.block_until_ready(out_f32)
    assert out_f32.shape == (B, (H // 2) * (W // 2), 2 * C)
    assert jnp.allclose(out_f32, ref, atol=1e-3, rtol=1e-3)

    # Default path: bf16 MXU inputs (centered in f32, f32 stats/accumulation).
    out_def = patch_merging_pallas(x, (H, W), gamma, beta, w_reduction)
    out_def = jax.block_until_ready(out_def)
    assert out_def.shape == (B, (H // 2) * (W // 2), 2 * C)
    assert jnp.allclose(out_def, ref, atol=5e-2, rtol=5e-2)

    # Slightly larger shape exercising a multi-step grid with the weight
    # block resident across iterations (exact path, tight tolerance).
    B2, Cb, Hb, Wb = 2, 16, 32, 32
    kx2, kg2, kb2, kw2 = jax.random.split(jax.random.PRNGKey(1), 4)
    xb = jax.random.normal(kx2, (B2, Hb * Wb, Cb), dtype=jnp.float32)
    gb = 1.0 + 0.1 * jax.random.normal(kg2, (4 * Cb,), dtype=jnp.float32)
    bb = 0.1 * jax.random.normal(kb2, (4 * Cb,), dtype=jnp.float32)
    wb = jax.random.normal(kw2, (2 * Cb, 4 * Cb), dtype=jnp.float32) * (
        1.0 / jnp.sqrt(4.0 * Cb))
    refb = patch_merging_ref(xb, (Hb, Wb), gb, bb, wb)
    outb = patch_merging_pallas(xb, (Hb, Wb), gb, bb, wb,
                                matmul_dtype=jnp.float32)
    outb = jax.block_until_ready(outb)
    assert jnp.allclose(outb, refb, atol=1e-3, rtol=1e-3)

    print("KERNEL_OK")
</pallas_src>

<mosaic_0001>
module attributes {stable_mosaic.version = 11 : i64} {
  func.func @_patch_merge_kernel(%arg0: i32, %arg1: memref<8x2x8x8xf32, #tpu.memory_space<vmem>>, %arg2: memref<2x8x8xf32, #tpu.memory_space<vmem>>, %arg3: memref<1x1x8xf32, #tpu.memory_space<vmem>>, %arg4: memref<1x1x8xf32, #tpu.memory_space<vmem>>, %arg5: memref<8x8x8xf32, #tpu.memory_space<vmem>>) attributes {dimension_semantics = [#tpu.dimension_semantics<parallel>], iteration_bounds = array<i64: 2>, scalar_prefetch = 0 : i64, scratch_operands = 0 : i64, tpu.core_type = #tpu.core_type<tc>, window_params = [{transform_indices = @transform_0, window_bounds = array<i64: 8, 2, 8, 8>}, {pipeline_mode = #tpu.pipeline_mode<synchronous>, transform_indices = @transform_1, window_bounds = array<i64: 2, 8, 8>}, {pipeline_mode = #tpu.pipeline_mode<synchronous>, transform_indices = @transform_2, window_bounds = array<i64: 1, 1, 8>}, {pipeline_mode = #tpu.pipeline_mode<synchronous>, transform_indices = @transform_3, window_bounds = array<i64: 1, 1, 8>}, {transform_indices = @transform_4, window_bounds = array<i64: 8, 8, 8>}]} {
    %c0 = arith.constant 0 : index
    %c0_0 = arith.constant 0 : index
    %c0_1 = arith.constant 0 : index
    %c0_2 = arith.constant 0 : index
    %0 = vector.load %arg1[%c0, %c0_0, %c0_1, %c0_2] : memref<8x2x8x8xf32, #tpu.memory_space<vmem>>, vector<8x2x8x8xf32>
    %cst = arith.constant dense<0.000000e+00> : vector<8x8xf32>
    %1 = vector.multi_reduction <add>, %0, %cst [1, 3] : vector<8x2x8x8xf32> to vector<8x8xf32>
    %2 = vector.shape_cast %1 : vector<8x8xf32> to vector<8x1x8x1xf32>
    %3 = arith.mulf %0, %0 : vector<8x2x8x8xf32>
    %cst_3 = arith.constant dense<0.000000e+00> : vector<8x8xf32>
    %4 = vector.multi_reduction <add>, %3, %cst_3 [1, 3] : vector<8x2x8x8xf32> to vector<8x8xf32>
    %5 = vector.shape_cast %4 : vector<8x8xf32> to vector<8x1x8x1xf32>
    %cst_4 = arith.constant 6.250000e-02 : f32
    %6 = vector.broadcast %cst_4 : f32 to vector<8x1x8x1xf32>
    %7 = arith.mulf %2, %6 : vector<8x1x8x1xf32>
    %cst_5 = arith.constant 6.250000e-02 : f32
    %8 = vector.broadcast %cst_5 : f32 to vector<8x1x8x1xf32>
    %9 = arith.mulf %5, %8 : vector<8x1x8x1xf32>
    %10 = arith.mulf %7, %7 : vector<8x1x8x1xf32>
    %11 = arith.subf %9, %10 : vector<8x1x8x1xf32>
    %cst_6 = arith.constant 9.99999974E-6 : f32
    %12 = vector.broadcast %cst_6 : f32 to vector<8x1x8x1xf32>
    %13 = arith.addf %11, %12 : vector<8x1x8x1xf32>
    %14 = math.rsqrt %13 : vector<8x1x8x1xf32>
    %15 = vector.extract_strided_slice %0 {offsets = [0, 0, 0, 0], sizes = [8, 1, 8, 8], strides = [1, 1, 1, 1]} : vector<8x2x8x8xf32> to vector<8x1x8x8xf32>
    %16 = vector.shape_cast %15 : vector<8x1x8x8xf32> to vector<8x8x8xf32>
    %17 = vector.shape_cast %16 : vector<8x8x8xf32> to vector<64x8xf32>
    %18 = vector.extract_strided_slice %0 {offsets = [0, 1, 0, 0], sizes = [8, 1, 8, 8], strides = [1, 1, 1, 1]} : vector<8x2x8x8xf32> to vector<8x1x8x8xf32>
    %19 = vector.shape_cast %18 : vector<8x1x8x8xf32> to vector<8x8x8xf32>
    %20 = vector.shape_cast %19 : vector<8x8x8xf32> to vector<64x8xf32>
    %c0_7 = arith.constant 0 : index
    %c0_8 = arith.constant 0 : index
    %c0_9 = arith.constant 0 : index
    %21 = vector.load %arg2[%c0_7, %c0_8, %c0_9] : memref<2x8x8xf32, #tpu.memory_space<vmem>>, vector<1x8x8xf32>
    %22 = vector.shape_cast %21 : vector<1x8x8xf32> to vector<8x8xf32>
    %cst_10 = arith.constant dense<0.000000e+00> : vector<64x8xf32>
    %23 = tpu.matmul %17, %22, %cst_10 {dimension_numbers = #tpu.dot_dimension_numbers<[1], [0], [0], [1], [0, 0, 1, 1], [], []>} : vector<64x8xf32>, vector<8x8xf32>, vector<64x8xf32> -> vector<64x8xf32>
    %c1 = arith.constant 1 : index
    %c0_11 = arith.constant 0 : index
    %c0_12 = arith.constant 0 : index
    %24 = vector.load %arg2[%c1, %c0_11, %c0_12] : memref<2x8x8xf32, #tpu.memory_space<vmem>>, vector<1x8x8xf32>
    %25 = vector.shape_cast %24 : vector<1x8x8xf32> to vector<8x8xf32>
    %cst_13 = arith.constant dense<0.000000e+00> : vector<64x8xf32>
    %26 = tpu.matmul %20, %25, %cst_13 {dimension_numbers = #tpu.dot_dimension_numbers<[1], [0], [0], [1], [0, 0, 1, 1], [], []>} : vector<64x8xf32>, vector<8x8xf32>, vector<64x8xf32> -> vector<64x8xf32>
    %27 = arith.addf %23, %26 : vector<64x8xf32>
    %28 = vector.shape_cast %27 : vector<64x8xf32> to vector<8x8x8xf32>
    %29 = vector.shape_cast %7 : vector<8x1x8x1xf32> to vector<8x8x1xf32>
    %30 = vector.shape_cast %14 : vector<8x1x8x1xf32> to vector<8x8x1xf32>
    %c0_14 = arith.constant 0 : index
    %c0_15 = arith.constant 0 : index
    %c0_16 = arith.constant 0 : index
    %31 = vector.load %arg3[%c0_14, %c0_15, %c0_16] : memref<1x1x8xf32, #tpu.memory_space<vmem>>, vector<1x1x8xf32>
    %32 = vector.broadcast %29 : vector<8x8x1xf32> to vector<8x8x8xf32>
    %33 = vector.broadcast %31 : vector<1x1x8xf32> to vector<8x8x8xf32>
    %34 = arith.mulf %32, %33 : vector<8x8x8xf32>
    %35 = arith.subf %28, %34 : vector<8x8x8xf32>
    %36 = vector.broadcast %30 : vector<8x8x1xf32> to vector<8x8x8xf32>
    %37 = arith.mulf %35, %36 : vector<8x8x8xf32>
    %c0_17 = arith.constant 0 : index
    %c0_18 = arith.constant 0 : index
    %c0_19 = arith.constant 0 : index
    %38 = vector.load %arg4[%c0_17, %c0_18, %c0_19] : memref<1x1x8xf32, #tpu.memory_space<vmem>>, vector<1x1x8xf32>
    %39 = vector.broadcast %38 : vector<1x1x8xf32> to vector<8x8x8xf32>
    %40 = arith.addf %37, %39 : vector<8x8x8xf32>
    %c0_20 = arith.constant 0 : index
    %c0_21 = arith.constant 0 : index
    %c0_22 = arith.constant 0 : index
    %41 = vector.load %arg5[%c0_20, %c0_21, %c0_22] : memref<8x8x8xf32, #tpu.memory_space<vmem>>, vector<8x8x8xf32>
    tpu.vector_store %arg5[%c0_20, %c0_21, %c0_22], %40 {strides = array<i32>} : memref<8x8x8xf32, #tpu.memory_space<vmem>>, vector<8x8x8xf32>,
    return
  }
  func.func @transform_0(%arg0: i32) -> (i32, i32, i32, i32) {
    %c0_i32 = arith.constant 0 : i32
    %c0_i32_0 = arith.constant 0 : i32
    %c0_i32_1 = arith.constant 0 : i32
    %c0_i32_2 = arith.constant 0 : i32
    return %arg0, %c0_i32, %c0_i32_0, %c0_i32_1 : i32, i32, i32, i32
  }
  func.func @transform_1(%arg0: i32) -> (i32, i32, i32) {
    %c0_i32 = arith.constant 0 : i32
    %c0_i32_0 = arith.constant 0 : i32
    %c0_i32_1 = arith.constant 0 : i32
    %c0_i32_2 = arith.constant 0 : i32
    return %c0_i32, %c0_i32_0, %c0_i32_1 : i32, i32, i32
  }
  func.func @transform_2(%arg0: i32) -> (i32, i32, i32) {
    %c0_i32 = arith.constant 0 : i32
    %c0_i32_0 = arith.constant 0 : i32
    %c0_i32_1 = arith.constant 0 : i32
    %c0_i32_2 = arith.constant 0 : i32
    return %c0_i32, %c0_i32_0, %c0_i32_1 : i32, i32, i32
  }
  func.func @transform_3(%arg0: i32) -> (i32, i32, i32) {
    %c0_i32 = arith.constant 0 : i32
    %c0_i32_0 = arith.constant 0 : i32
    %c0_i32_1 = arith.constant 0 : i32
    %c0_i32_2 = arith.constant 0 : i32
    return %c0_i32, %c0_i32_0, %c0_i32_1 : i32, i32, i32
  }
  func.func @transform_4(%arg0: i32) -> (i32, i32, i32) {
    %c0_i32 = arith.constant 0 : i32
    %c0_i32_0 = arith.constant 0 : i32
    %c0_i32_1 = arith.constant 0 : i32
    return %arg0, %c0_i32, %c0_i32_0 : i32, i32, i32
  }
}

</mosaic_0001>

<bundles_post_ra>
// kernel: tpu_custom_call.1
= control target key start
LH: loop header
LB: loop body
LE: loop exit
PB: predicated region body
PF: predicated region fallthrough
CT: control target
= control target key end

     0   :  { %s765_s15 = smov 0   ;;  %s1055_s0 = inlined_call_operand.vmem [shape: f32[16,2,8,8], index: 0, kind: input, shape index: {}]   ;;  %s1056_s1 = inlined_call_operand.vmem [shape: f32[2,8,8], index: 1, kind: input, shape index: {}]   ;;  %s1057_s2 = inlined_call_operand.vmem [shape: f32[1,1,8], index: 2, kind: input, shape index: {}]   ;;  %s1058_s3 = inlined_call_operand.vmem [shape: f32[1,1,8], index: 3, kind: input, shape index: {}]   ;;  %s1059_s4 = inlined_call_operand.vmem [shape: f32[16,8,8], index: 4, kind: output, shape index: {}]  }
   0x1 LB: > { %s674_s16 = sadd.s32 4294967295, %s738_s15   ;;  %p678_p0 = scmp.ge.s32.totalorder %s738_s15, 1  ;;  %s738_s15 = sphi %s765_s15, %s14_s15  }
   0x2   : > { %p164_p1 = scmp.lt.s32.totalorder %s738_s15, 3 }
   0x4   : > { %p165_p2 = pnand %p678_p0, %p164_p1 }
   0x5   : > { %s679_s21 = sshll.u32 (!%p165_p2), %s674_s16, 3 }
   0x6   : > { %168 = sbr.rel (%p165_p2) target bundleno = 205 (0xcd), region = 36  ;;  %p192_p3 = scmp.lt.s32.totalorder (!%p165_p2), %s679_s21, 15 }
   0xb   : > { %v684_v0 = vld [vmem:[%s1056_s1 + $0x8] sm:$0xff]  ;;  %v437_v1 = vld [vmem:[%s1056_s1] sm:$0xff]  ;;  %s1061_s21 = smov (!%p192_p3, %s679_s21), 15  ;;  %vm220_vm0 = vcmask 64512  }
   0xc   : > { %479 = vmatpush.msra.mxu0 %v684_v0  ;;  %704 = vmatpush.msra.mxu2 %v684_v0  ;;  %s703_s22 = sshll.u32 %s1061_s21, 4  ;;  %s683_s28 = sshll.u32 %s1061_s21, 3 }
   0xd   : > { %544 = vmatpush.msra.mxu1 %v437_v1  ;;  %705 = vmatpush.msra.mxu3 %v437_v1  ;;  %s785_s25 = scalar_lea.vmem %s1055_s0, %s703_s22  ;;  %s975_s7 = scalar_lea.vmem %s1059_s4, %s683_s28 }
   0xe   : > { %v205_v2 = vld [vmem:[%s785_s25 + $0x8] sm:$0xff]  ;;  %v204_v4 = vld [vmem:[%s785_s25] sm:$0xff]  ;;  %v810_v12 = vld [vmem:[%s785_s25 + $0x58] sm:$0xff] }
   0xf   : > { %v789_v3 = vld [vmem:[%s785_s25 + $0x48] sm:$0xff]  ;;  %685 = vmatmul.msk.f32.vlgmr.msra.gmra.mxu0 %vm220_vm0, %v205_v2  ;;  %v796_v5 = vld [vmem:[%s785_s25 + $0x40] sm:$0xff]  ;;  %693 = vmatmul.msk.f32.vlgmr.msra.gmra.mxu1 %vm220_vm0, %v204_v4  ;;  %v221_v15 = vsel %vm220_vm0, %v204_v4, 0.0  ;;  %v222_v16 = vsel %vm220_vm0, %v205_v2, 0.0  ;;  %v214_v17 = vld [vmem:[%s785_s25 + $0x50] sm:$0xff]  ;;  %v247_v24 = vsel %vm220_vm0, %v810_v12, 0.0  ;;  %v262_v31 = vmul.f32 %v205_v2, %v205_v2 }
  0x10   : > { %689 = vmatmul.msk.f32.vlgmr.msra.gmra.mxu2 %vm220_vm0, %v789_v3  ;;  %v242_v6 = vsel %vm220_vm0, %v789_v3, 0.0  ;;  %v208_v7 = vld [vmem:[%s785_s25 + $0x20] sm:$0xff]  ;;  %v209_v8 = vld [vmem:[%s785_s25 + $0x28] sm:$0xff]  ;;  %697 = vmatmul.msk.f32.vlgmr.msra.gmra.mxu3 %vm220_vm0, %v796_v5  ;;  %v241_v9 = vsel %vm220_vm0, %v796_v5, 0.0  ;;  %v816_v18 = vld [vmem:[%s785_s25 + $0x30] sm:$0xff]  ;;  %v223_v20 = vadd.f32 %v222_v16, %v221_v15  ;;  %v246_v23 = vsel %vm220_vm0, %v214_v17, 0.0 }
  0x11   : > { %v231_v10 = vsel %vm220_vm0, %v208_v7, 0.0  ;;  %v232_v11 = vsel %vm220_vm0, %v209_v8, 0.0  ;;  %v243_v13 = vadd.f32 %v242_v6, %v241_v9  ;;  %v211_v19 = vld [vmem:[%s785_s25 + $0x38] sm:$0xff]  ;;  %v206_v22 = vld [vmem:[%s785_s25 + $0x10] sm:$0xff]  ;;  %v236_v25 = vsel %vm220_vm0, %v816_v18, 0.0  ;;  %v217_v36 = vld [vmem:[%s785_s25 + $0x68] sm:$0xff] }
  0x12   : > { %v233_v14 = vadd.f32 %v232_v11, %v231_v10  ;;  %v207_v21 = vld [vmem:[%s785_s25 + $0x18] sm:$0xff]  ;;  %224 = vadd.xlane.f32.xlu0 %v223_v20  ;;  %v237_v26 = vsel %vm220_vm0, %v211_v19, 0.0  ;;  %v226_v27 = vsel %vm220_vm0, %v206_v22, 0.0  ;;  %v248_v29 = vadd.f32 %v247_v24, %v246_v23  ;;  %v218_v34 = vld [vmem:[%s785_s25 + $0x70] sm:$0xff]  ;;  %v216_v37 = vld [vmem:[%s785_s25 + $0x60] sm:$0xff] }
  0x13   : > { %244 = vadd.xlane.f32.xlu2 %v243_v13  ;;  %v227_v28 = vsel %vm220_vm0, %v207_v21, 0.0  ;;  %v238_v30 = vadd.f32 %v237_v26, %v236_v25  ;;  %v261_v32 = vmul.f32 %v204_v4, %v204_v4  ;;  %v219_v35 = vld [vmem:[%s785_s25 + $0x78] sm:$0xff]  ;;  %v256_v38 = vsel %vm220_vm0, %v218_v34, 0.0 }
  0x14   : > { %234 = vadd.xlane.f32.xlu1 %v233_v14  ;;  %v228_v33 = vadd.f32 %v227_v28, %v226_v27  ;;  %v257_v39 = vsel %vm220_vm0, %v219_v35, 0.0  ;;  %v278_v41 = vsel %vm220_vm0, %v262_v31, 0.0  ;;  %v251_v42 = vsel %vm220_vm0, %v216_v37, 0.0 }
  0x15   : > { %v277_v40 = vsel %vm220_vm0, %v261_v32, 0.0  ;;  %v252_v43 = vsel %vm220_vm0, %v217_v36, 0.0  ;;  %v258_v44 = vadd.f32 %v257_v39, %v256_v38  ;;  %v265_v47 = vmul.f32 %v208_v7, %v208_v7 }
  0x16   : > { %v279_v45 = vadd.f32 %v278_v41, %v277_v40  ;;  %v253_v46 = vadd.f32 %v252_v43, %v251_v42  ;;  %v266_v48 = vmul.f32 %v209_v8, %v209_v8  ;;  %v267_v49 = vmul.f32 %v816_v18, %v816_v18 }
  0x17   : > { %686 = vmatmul.msk.f32.gmra.mxu0 %vm220_vm0, %v207_v21  ;;  %694 = vmatmul.msk.f32.gmra.mxu1 %vm220_vm0, %v206_v22  ;;  %v268_v50 = vmul.f32 %v211_v19, %v211_v19  ;;  %v264_v51 = vmul.f32 %v207_v21, %v207_v21  ;;  %v263_v52 = vmul.f32 %v206_v22, %v206_v22  ;;  %v287_v53 = vsel %vm220_vm0, %v265_v47, 0.0 }
  0x18   : > { %690 = vmatmul.msk.f32.gmra.mxu2 %vm220_vm0, %v810_v12  ;;  %698 = vmatmul.msk.f32.gmra.mxu3 %vm220_vm0, %v214_v17  ;;  %v288_v54 = vsel %vm220_vm0, %v266_v48, 0.0  ;;  %v292_v55 = vsel %vm220_vm0, %v267_v49, 0.0  ;;  %v272_v59 = vmul.f32 %v810_v12, %v810_v12  ;;  %v271_v60 = vmul.f32 %v214_v17, %v214_v17 }
  0x19   : > { %v293_v56 = vsel %vm220_vm0, %v268_v50, 0.0  ;;  %v282_v57 = vsel %vm220_vm0, %v263_v52, 0.0  ;;  %v283_v58 = vsel %vm220_vm0, %v264_v51, 0.0  ;;  %v289_v61 = vadd.f32 %v288_v54, %v287_v53  ;;  %v887_v50 = vld [vmem:[%s1057_s2] ss:$0 sm:$0xff] }
  0x1a   : > { %229 = vadd.xlane.f32.xlu0 %v228_v33  ;;  %v294_v62 = vadd.f32 %v293_v56, %v292_v55  ;;  %v274_v63 = vmul.f32 %v217_v36, %v217_v36  ;;  %v273_v0 = vmul.f32 %v216_v37, %v216_v37  ;;  %v284_v1 = vadd.f32 %v283_v58, %v282_v57 }
  0x1b   : > { %249 = vadd.xlane.f32.xlu2 %v248_v29  ;;  %v270_v2 = vmul.f32 %v789_v3, %v789_v3  ;;  %v269_v4 = vmul.f32 %v796_v5, %v796_v5  ;;  %v302_v6 = vsel %vm220_vm0, %v271_v60, 0.0  ;;  %v275_v14 = vmul.f32 %v218_v34, %v218_v34 }
  0x1c   : > { %239 = vadd.xlane.f32.xlu1 %v238_v30  ;;  %v308_v9 = vsel %vm220_vm0, %v274_v63, 0.0  ;;  %v276_v5 = vmul.f32 %v219_v35, %v219_v35 }
  0x1d   : > { %v297_v10 = vsel %vm220_vm0, %v269_v4, 0.0  ;;  %v298_v11 = vsel %vm220_vm0, %v270_v2, 0.0  ;;  %v312_v15 = vsel %vm220_vm0, %v275_v14, 0.0 }
  0x1e   : > { %v299_v13 = vadd.f32 %v298_v11, %v297_v10  ;;  %v313_v16 = vsel %vm220_vm0, %v276_v5, 0.0 }
  0x1f   : > { %687 = vmatmul.msk.f32.gmra.mxu0 %vm220_vm0, %v209_v8  ;;  %695 = vmatmul.msk.f32.gmra.mxu1 %vm220_vm0, %v208_v7  ;;  %v303_v7 = vsel %vm220_vm0, %v272_v59, 0.0  ;;  %v307_v8 = vsel %vm220_vm0, %v273_v0, 0.0  ;;  %v314_v17 = vadd.f32 %v313_v16, %v312_v15 }
  0x20   : > { %691 = vmatmul.msk.f32.gmra.mxu2 %vm220_vm0, %v217_v36  ;;  %699 = vmatmul.msk.f32.gmra.mxu3 %vm220_vm0, %v216_v37  ;;  %v304_v12 = vadd.f32 %v303_v7, %v302_v6  ;;  %v309_v3 = vadd.f32 %v308_v9, %v307_v8 }
  0x22   : > { %254 = vadd.xlane.f32.xlu0 %v253_v46 }
  0x23   : > { %280 = vadd.xlane.f32.xlu2 %v279_v45 }
  0x24   : > { %259 = vadd.xlane.f32.xlu1 %v258_v44 }
  0x27   : > { %688 = vmatmul.msk.f32.gmra.mxu0 %vm220_vm0, %v211_v19  ;;  %696 = vmatmul.msk.f32.gmra.mxu1 %vm220_vm0, %v816_v18 }
  0x28   : > { %692 = vmatmul.msk.f32.gmra.mxu2 %vm220_vm0, %v219_v35  ;;  %700 = vmatmul.msk.f32.gmra.mxu3 %vm220_vm0, %v218_v34 }
  0x2a   : > { %285 = vadd.xlane.f32.xlu0 %v284_v1 }
  0x2b   : > { %295 = vadd.xlane.f32.xlu2 %v294_v62 }
  0x2c   : > { %290 = vadd.xlane.f32.xlu1 %v289_v61 }
  0x32   : > { %300 = vadd.xlane.f32.xlu0 %v299_v13 }
  0x33   : > { %310 = vadd.xlane.f32.xlu2 %v309_v3 }
  0x34   : > { %305 = vadd.xlane.f32.xlu1 %v304_v12 }
  0x3a   : > { %315 = vadd.xlane.f32.xlu0 %v314_v17 }
  0x85   : > { %v225_v20 = vpop.xlane.xlu0 %224 }
  0x86   : > { %v245_v18 = vpop.xlane.xlu2 %244  ;;  %v317_v26 = vmul.f32 0.0625, %v225_v20 }
  0x87   : > { %v235_v19 = vpop.xlane.xlu1 %234  ;;  %v901_v59 = vmul.f32 0.0625, %v245_v18 }
  0x88   : > { %v333_v29 = vmul.f32 %v317_v26, %v317_v26  ;;  %v319_v35 = vmul.f32 0.0625, %v235_v19  ;;  %v574_v1 = vmul.f32 %v887_v50, %v317_v26 }
  0x89   : > { %v337_v12 = vmul.f32 %v901_v59, %v901_v59 }
  0x8a   : > { %v335_v41 = vmul.f32 %v319_v35, %v319_v35  ;;  %v917_v3 = vmul.f32 %v887_v50, %v319_v35 }
  0x8c   : > { %v481_v24 = vpop.f32.mrf.mxu0  ;;  %v546_v25 = vpop.f32.mrf.mxu1 }
  0x8d   : > { %v230_v23 = vpop.xlane.xlu0 %229  ;;  %v547_v0 = vadd.f32 %v546_v25, %v481_v24 }
  0x8e   : > { %v250_v21 = vpop.xlane.xlu2 %249  ;;  %v318_v38 = vmul.f32 0.0625, %v230_v23 }
  0x8f   : > { %v240_v22 = vpop.xlane.xlu1 %239  ;;  %v322_v51 = vmul.f32 0.0625, %v250_v21  ;;  %v582_v5 = vsub.f32 %v547_v0, %v574_v1 }
  0x90   : > { %v877_v36 = vmul.f32 0.0625, %v240_v22  ;;  %v334_v46 = vmul.f32 %v318_v38, %v318_v38  ;;  %v920_v15 = vmul.f32 %v887_v50, %v318_v38 }
  0x91   : > { %v338_v2 = vmul.f32 %v322_v51, %v322_v51 }
  0x92   : > { %v336_v42 = vmul.f32 %v877_v36, %v877_v36 }
  0x93   : > { %v891_v54 = vpop.f32.mrf.mxu2  ;;  %v893_v55 = vpop.f32.mrf.mxu3 }
  0x94   : > { %v484_v33 = vpop.f32.mrf.mxu0  ;;  %v549_v34 = vpop.f32.mrf.mxu1 }
  0x95   : > { %v255_v31 = vpop.xlane.xlu0 %254  ;;  %v922_v18 = vadd.f32 %v549_v34, %v484_v33  ;;  %v955_v33 = vld [vmem:[%s1058_s3] ss:$0 sm:$0xff] }
  0x96   : > { %v281_v28 = vpop.xlane.xlu2 %280  ;;  %v895_v56 = vmul.f32 0.0625, %v255_v31 }
  0x97   : > { %v875_v27 = vpop.xlane.xlu1 %259  ;;  %v325_v30 = vmul.f32 0.0625, %v281_v28 }
  0x98   : > { %v339_v8 = vmul.f32 %v895_v56, %v895_v56  ;;  %v928_v22 = vmul.f32 0.0625, %v875_v27  ;;  %v945_v27 = vmul.f32 %v887_v50, %v322_v51 }
  0x99   : > { %v341_v32 = vsub.f32 %v325_v30, %v333_v29 }
  0x9b   : > { %v879_v37 = vadd.f32 1e-05, %v341_v32  ;;  %v949_v32 = vmul.f32 %v887_v50, %v877_v36  ;;  %v496_v34 = vpop.f32.mrf.mxu2  ;;  %v561_v35 = vpop.f32.mrf.mxu3  ;;  %v583_v36 = vsub.f32 %v922_v18, %v920_v15 }
  0x9c   : > { %v487_v61 = vpop.f32.mrf.mxu0  ;;  %v552_v62 = vpop.f32.mrf.mxu1 }
  0x9d   : > { %716 = vrsqrt.f32 %v879_v37  ;;  %v286_v45 = vpop.xlane.xlu0 %285  ;;  %vm363_vm2 = vweird.f32 %v879_v37  ;;  %v553_v28 = vadd.f32 %v552_v62, %v487_v61 }
  0x9e   : > { %v296_v40 = vpop.xlane.xlu2 %295  ;;  %v326_v47 = vmul.f32 0.0625, %v286_v45 }
  0x9f   : > { %v291_v39 = vpop.xlane.xlu1 %290  ;;  %v328_v44 = vmul.f32 0.0625, %v296_v40 }
  0xa0   : > { %v327_v43 = vmul.f32 0.0625, %v291_v39  ;;  %v342_v52 = vsub.f32 %v326_v47, %v334_v46  ;;  %v584_v47 = vsub.f32 %v553_v28, %v917_v3 }
  0xa1   : > { %v344_v49 = vsub.f32 %v328_v44, %v336_v42 }
  0xa2   : > { %v343_v48 = vsub.f32 %v327_v43, %v335_v41  ;;  %v905_v63 = vadd.f32 1e-05, %v342_v52  ;;  %v340_v43 = vmul.f32 %v928_v22, %v928_v22 }
  0xa3   : > { %v889_v53 = vpop.eup %716  ;;  %v899_v58 = vadd.f32 1e-05, %v344_v49  ;;  %v499_v18 = vpop.f32.mrf.mxu2 }
  0xa4   : > { %v897_v57 = vadd.f32 1e-05, %v343_v48  ;;  %v358_v60 = vmul.f32 %v889_v53, %v879_v37  ;;  %vm364_vm1 = vweird.f32 %v889_v53  ;;  %v490_v41 = vpop.f32.mrf.mxu0  ;;  %v555_v42 = vpop.f32.mrf.mxu1  ;;  %vm373_vm10 = vweird.f32 %v905_v63 }
  0xa5   : > { %v301_v11 = vpop.xlane.xlu0 %300  ;;  %vm365_vm3 = vmor %vm363_vm2, %vm364_vm1  ;;  %vm393_vm6 = vweird.f32 %v899_v58 }
  0xa6   : > { %718 = vrsqrt.f32 %v897_v57  ;;  %v359_v4 = vmul.f32 %v889_v53, %v358_v60  ;;  %v311_v7 = vpop.xlane.xlu2 %310  ;;  %v329_v14 = vmul.f32 0.0625, %v301_v11  ;;  %vm383_vm4 = vweird.f32 %v897_v57 }
  0xa7   : > { %720 = vrsqrt.f32 %v899_v58  ;;  %v306_v6 = vpop.xlane.xlu1 %305  ;;  %v331_v10 = vmul.f32 0.0625, %v311_v7 }
  0xa8   : > { %722 = vrsqrt.f32 %v905_v63  ;;  %v330_v9 = vmul.f32 0.0625, %v306_v6  ;;  %v360_v13 = vmul.f32 0.5, %v359_v4  ;;  %v345_v20 = vsub.f32 %v329_v14, %v337_v12 }
  0xa9   : > { %v347_v17 = vsub.f32 %v331_v10, %v339_v8  ;;  %v562_v14 = vadd.f32 %v561_v35, %v496_v34 }
  0xaa   : > { %v346_v16 = vsub.f32 %v330_v9, %v338_v2  ;;  %v361_v19 = vsub.f32 1.5, %v360_v13  ;;  %v940_v30 = vadd.f32 1e-05, %v345_v20 }
  0xab   : > { %v933_v24 = vadd.f32 1e-05, %v347_v17 }
  0xac   : > { %v925_v21 = vpop.eup %718  ;;  %v931_v23 = vadd.f32 1e-05, %v346_v16  ;;  %v362_v26 = vmul.f32 %v889_v53, %v361_v19  ;;  %v564_v19 = vpop.f32.mrf.mxu3 }
  0xad   : > { %v935_v25 = vpop.eup %720  ;;  %v378_v29 = vmul.f32 %v925_v21, %v897_v57  ;;  %v316_v46 = vpop.xlane.xlu0 %315  ;;  %vm384_vm5 = vweird.f32 %v925_v21 }
  0xae   : > { %v942_v31 = vpop.eup %722  ;;  %v388_v37 = vmul.f32 %v935_v25, %v899_v58  ;;  %724 = vrsqrt.f32 %v931_v23  ;;  %v366_v38 = vsel %vm365_vm3, %v889_v53, %v362_v26  ;;  %v556_v53 = vadd.f32 %v555_v42, %v490_v41  ;;  %vm385_vm9 = vmor %vm383_vm4, %vm384_vm5 }
  0xaf   : > { %v379_v39 = vmul.f32 %v925_v21, %v378_v29  ;;  %v368_v40 = vmul.f32 %v942_v31, %v905_v63  ;;  %v590_v44 = vmul.f32 %v582_v5, %v366_v38  ;;  %726 = vrsqrt.f32 %v933_v24 }
  0xb0   : > { %v389_v45 = vmul.f32 %v935_v25, %v388_v37  ;;  %728 = vrsqrt.f32 %v940_v30  ;;  %v332_v60 = vmul.f32 0.0625, %v316_v46  ;;  %vm394_vm7 = vweird.f32 %v935_v25 }
  0xb1   : > { %v380_v48 = vmul.f32 0.5, %v379_v39  ;;  %v369_v49 = vmul.f32 %v942_v31, %v368_v40  ;;  %v602_v51 = vadd.f32 %v955_v33, %v590_v44  ;;  %vm374_vm8 = vweird.f32 %v942_v31  ;;  %vm395_vm11 = vmor %vm393_vm6, %vm394_vm7 }
  0xb2   : > { %v390_v52 = vmul.f32 0.5, %v389_v45  ;;  %v348_v2 = vsub.f32 %v332_v60, %v340_v43  ;;  %v585_v9 = vsub.f32 %v556_v53, %v949_v32  ;;  %vm375_vm12 = vmor %vm373_vm10, %vm374_vm8  ;;  %v565_v37 = vadd.f32 %v564_v19, %v499_v18 }
  0xb3   : > { %v381_v61 = vsub.f32 1.5, %v380_v48  ;;  %v370_v62 = vmul.f32 0.5, %v369_v49  ;;  %610 = vst.msk [vmem:[%s975_s7] sm:$0xff] %vm220_vm0, %v602_v51  ;;  %vm413_vm14 = vweird.f32 %v931_v23  ;;  %v580_v40 = vmul.f32 %v887_v50, %v895_v56 }
  0xb4   : > { %v983_v0 = vpop.eup %724  ;;  %v391_v1 = vsub.f32 1.5, %v390_v52  ;;  %v996_v10 = vadd.f32 1e-05, %v348_v2  ;;  %v587_v41 = vsub.f32 %v562_v14, %v945_v27  ;;  %vm423_vm3 = vweird.f32 %v933_v24  ;;  %v502_v52 = vpop.f32.mrf.mxu2 }
  0xb5   : > { %v382_v4 = vmul.f32 %v925_v21, %v381_v61  ;;  %v371_v6 = vsub.f32 1.5, %v370_v62  ;;  %v408_v57 = vmul.f32 %v983_v0, %v931_v23  ;;  %v727_v7 = vpop.eup %726  ;;  %vm414_vm13 = vweird.f32 %v983_v0  ;;  %v567_v53 = vpop.f32.mrf.mxu3 }
  0xb6   : > { %v392_v8 = vmul.f32 %v935_v25, %v391_v1  ;;  %v729_v11 = vpop.eup %728  ;;  %v418_v63 = vmul.f32 %v727_v7, %v933_v24  ;;  %730 = vrsqrt.f32 %v996_v10  ;;  %vm424_vm15 = vweird.f32 %v727_v7  ;;  %vm415_vm1 = vmor %vm413_vm14, %vm414_vm13 }
  0xb7   : > { %v386_v12 = vsel %vm385_vm9, %v925_v21, %v382_v4  ;;  %v372_v3 = vmul.f32 %v942_v31, %v371_v6  ;;  %v409_v13 = vmul.f32 %v983_v0, %v408_v57  ;;  %v398_v16 = vmul.f32 %v729_v11, %v940_v30  ;;  %vm425_vm4 = vmor %vm423_vm3, %vm424_vm15 }
  0xb8   : > { %v592_v5 = vmul.f32 %v584_v47, %v386_v12  ;;  %v396_v15 = vsel %vm395_vm11, %v935_v25, %v392_v8  ;;  %v419_v21 = vmul.f32 %v727_v7, %v418_v63  ;;  %vm404_vm2 = vweird.f32 %v729_v11 }
  0xb9   : > { %v376_v17 = vsel %vm375_vm12, %v942_v31, %v372_v3  ;;  %v593_v58 = vmul.f32 %v585_v9, %v396_v15  ;;  %v410_v20 = vmul.f32 0.5, %v409_v13  ;;  %v399_v29 = vmul.f32 %v729_v11, %v398_v16 }
  0xba   : > { %v604_v26 = vadd.f32 %v955_v33, %v592_v5  ;;  %v591_v28 = vmul.f32 %v583_v36, %v376_v17  ;;  %v420_v34 = vmul.f32 0.5, %v419_v21  ;;  %v559_v31 = vadd.f32 %v893_v55, %v891_v54 }
  0xbb   : > { %v605_v32 = vadd.f32 %v955_v33, %v593_v58  ;;  %v411_v25 = vsub.f32 1.5, %v410_v20  ;;  %v400_v38 = vmul.f32 0.5, %v399_v29  ;;  %v578_v55 = vmul.f32 %v887_v50, %v901_v59 }
  0xbc   : > { %612 = vst.msk [vmem:[%s975_s7 + $0x10] sm:$0xff] %vm220_vm0, %v604_v26  ;;  %v603_v35 = vadd.f32 %v955_v33, %v591_v28  ;;  %v421_v39 = vsub.f32 1.5, %v420_v34  ;;  %v588_v43 = vsub.f32 %v565_v37, %v580_v40  ;;  %vm403_vm5 = vweird.f32 %v940_v30  ;;  %v731_v44 = vpop.eup %730 }
  0xbd   : > { %613 = vst.msk [vmem:[%s975_s7 + $0x18] sm:$0xff] %vm220_vm0, %v605_v32  ;;  %v412_v36 = vmul.f32 %v983_v0, %v411_v25  ;;  %v401_v54 = vsub.f32 1.5, %v400_v38  ;;  %v586_v45 = vsub.f32 %v559_v31, %v578_v55  ;;  %vm405_vm6 = vmor %vm403_vm5, %vm404_vm2  ;;  %v428_v49 = vmul.f32 %v731_v44, %v996_v10 }
  0xbe   : > { %611 = vst.msk [vmem:[%s975_s7 + $0x8] sm:$0xff] %vm220_vm0, %v603_v35  ;;  %v422_v23 = vmul.f32 %v727_v7, %v421_v39  ;;  %v568_v62 = vadd.f32 %v567_v53, %v502_v52  ;;  %vm434_vm7 = vweird.f32 %v731_v44  ;;  %v581_v1 = vmul.f32 %v887_v50, %v928_v22 }
  0xbf   : > { %v416_v42 = vsel %vm415_vm1, %v983_v0, %v412_v36  ;;  %v402_v27 = vmul.f32 %v729_v11, %v401_v54  ;;  %v429_v30 = vmul.f32 %v731_v44, %v428_v49  ;;  %vm433_vm8 = vweird.f32 %v996_v10 }
  0xc0   : > { %v595_v56 = vmul.f32 %v587_v41, %v416_v42  ;;  %v426_v46 = vsel %vm425_vm4, %v727_v7, %v422_v23  ;;  %v589_v4 = vsub.f32 %v568_v62, %v581_v1  ;;  %vm435_vm9 = vmor %vm433_vm8, %vm434_vm7 }
  0xc1   : > { %v596_v47 = vmul.f32 %v588_v43, %v426_v46  ;;  %v406_v48 = vsel %vm405_vm6, %v729_v11, %v402_v27  ;;  %v430_v61 = vmul.f32 0.5, %v429_v30 }
  0xc2   : > { %v607_v59 = vadd.f32 %v955_v33, %v595_v56  ;;  %v594_v51 = vmul.f32 %v586_v45, %v406_v48 }
  0xc3   : > { %v608_v24 = vadd.f32 %v955_v33, %v596_v47  ;;  %v431_v0 = vsub.f32 1.5, %v430_v61 }
  0xc4   : > { %615 = vst.msk [vmem:[%s975_s7 + $0x28] sm:$0xff] %vm220_vm0, %v607_v59  ;;  %v606_v60 = vadd.f32 %v955_v33, %v594_v51 }
  0xc5   : > { %616 = vst.msk [vmem:[%s975_s7 + $0x30] sm:$0xff] %vm220_vm0, %v608_v24  ;;  %v432_v2 = vmul.f32 %v731_v44, %v431_v0 }
  0xc6   : > { %614 = vst.msk [vmem:[%s975_s7 + $0x20] sm:$0xff] %vm220_vm0, %v606_v60 }
  0xc7   : > { %v436_v6 = vsel %vm435_vm9, %v731_v44, %v432_v2 }
  0xc8   : > { %v597_v57 = vmul.f32 %v589_v4, %v436_v6 }
  0xca   : > { %v609_v7 = vadd.f32 %v955_v33, %v597_v57 }
  0xcc   : > { %617 = vst.msk [vmem:[%s975_s7 + $0x38] sm:$0xff] %vm220_vm0, %v609_v7 }
  0xcd PF: > { %s14_s15 = sadd.s32 1, %s738_s15  }
  0xce   : > { %p11_p4 = scmp.ge.s32.totalorder %s14_s15, 4  }
  0xd0   :  { %13 = sbr.rel (!%p11_p4) target bundleno = 1 (0x1), region = 67 }

</bundles_post_ra>
